<compile_context>
chip_gen: v6e
topology: v6e:2x2x1
jax: 0.10.0
libtpu: 0.0.40
codegen_flags: <defaults>
</compile_context>

<pallas_src>
import functools

import jax
import jax.numpy as jnp
from jax.experimental import pallas as pl
from jax.experimental.pallas import tpu as pltpu

LANE = 128


def _round_up(n, m):
    return -(-n // m) * m


def _pad_to(a, rows, cols):
    r, c = a.shape
    return jnp.pad(a, ((0, rows - r), (0, cols - c)))


def _choose_block_rows(batch):
    rb = _round_up(batch, 8)
    if rb <= 256:
        return rb                    # one small tile; minimal row padding
    # Larger batches: cap tiles at 512 rows (amortizes ~0.35us per grid step)
    # and guarantee >=2 grid steps so v7x's second TensorCore is engaged.
    return min(512, _round_up((rb + 1) // 2, 8))


def _mlp_kernel(x_ref, w1_ref, b1_ref, w2_ref, b2_ref, w3_ref, b3_ref,
                out_ref, *, action_size):
    # fc1 + relu   (f32 MXU dots; kernel is memory-bound so f32 is free)
    h1 = jnp.maximum(
        jnp.dot(x_ref[...], w1_ref[...], preferred_element_type=jnp.float32)
        + b1_ref[...], 0.0)
    # fc2 + relu
    h2 = jnp.maximum(
        jnp.dot(h1, w2_ref[...], preferred_element_type=jnp.float32)
        + b2_ref[...], 0.0)
    # fc3 (no activation)
    logits = (jnp.dot(h2, w3_ref[...], preferred_element_type=jnp.float32)
              + b3_ref[...])

    # Quantize to the output dtype first so the fused argmax agrees exactly
    # with jnp.argmax over the stored bf16 logits.
    logits_q = logits.astype(out_ref.dtype).astype(jnp.float32)

    # Fused select_action: first-max argmax over the real action columns only
    # (padded lanes masked out) -- matches torch.max(1)[1] / jnp.argmax.
    # An all-NaN row would fall through to the out-of-range filler index;
    # harmless in practice.
    col = jax.lax.broadcasted_iota(jnp.int32, logits_q.shape, 1)
    masked = jnp.where(col < action_size, logits_q, -jnp.inf)
    row_max = jnp.max(masked, axis=1, keepdims=True)
    idx = jnp.where(masked == row_max, col, jnp.int32(logits_q.shape[1]))
    amax = jnp.min(idx, axis=1, keepdims=True).astype(jnp.float32)   # (rows, 1)

    # Pack the per-row action index into the first padded lane (col ==
    # action_size): a single lane-dense bf16 tile carries logits + actions,
    # instead of an extra 128-lane-wide int32 broadcast writeback.
    out_ref[...] = jnp.where(col == action_size, amax,
                             logits_q).astype(out_ref.dtype)


def prepare_params(w1, b1, w2, b2, w3, b3):
    """One-time parameter prep (hoisted out of the per-call path).

    Zero-pads hidden / action feature dims to 128 lanes; the state dim of w1
    is left unpadded (x is no longer feature-padded). One spare lane is
    reserved past action_size for the packed action index.
    """
    h1p = _round_up(w1.shape[1], LANE)
    h2p = _round_up(w2.shape[1], LANE)
    ap = _round_up(w3.shape[1] + 1, LANE)      # +1 spare lane for action idx
    w1p = _pad_to(w1, w1.shape[0], h1p)
    b1p = _pad_to(b1.reshape(1, -1), 1, h1p)
    w2p = _pad_to(w2, h1p, h2p)
    b2p = _pad_to(b2.reshape(1, -1), 1, h2p)
    w3p = _pad_to(w3, h2p, ap)
    b3p = _pad_to(b3.reshape(1, -1), 1, ap)
    return (w1p, b1p, w2p, b2p, w3p, b3p)


def mlp_forward(x, params, *, action_size):
    """Returns (logits[batch, action_size] f32, actions[batch] int32)."""
    w1p, b1p, w2p, b2p, w3p, b3p = params
    batch, state_size = x.shape
    ap = w3p.shape[1]

    block_rows = _choose_block_rows(batch)
    num_tiles = pl.cdiv(batch, block_rows)
    bp = num_tiles * block_rows

    # Only the batch dim is padded; the state dim stays at its real size
    # (block last dim == full array dim is legal, no 128-divisibility needed).
    x_p = jnp.pad(x, ((0, bp - batch), (0, 0))) if bp != batch else x

    resident = lambda a: pl.BlockSpec(a.shape, lambda i: (0, 0))

    out_p = pl.pallas_call(
        functools.partial(_mlp_kernel, action_size=action_size),
        out_shape=jax.ShapeDtypeStruct((bp, ap), jnp.bfloat16),
        grid=(num_tiles,),
        in_specs=[
            pl.BlockSpec((block_rows, state_size), lambda i: (i, 0)),  # x tile
            resident(w1p), resident(b1p),          # VMEM-resident params
            resident(w2p), resident(b2p),
            resident(w3p), resident(b3p),
        ],
        out_specs=pl.BlockSpec((block_rows, ap), lambda i: (i, 0)),
        compiler_params=pltpu.CompilerParams(
            dimension_semantics=("parallel",)),
    )(x_p, w1p, b1p, w2p, b2p, w3p, b3p)

    logits = out_p[:batch, :action_size].astype(jnp.float32)
    actions = out_p[:batch, action_size].astype(jnp.int32)
    return logits, actions


def init_params(key, state_size, action_size):
    # Mimic nn.Linear default init: U(-1/sqrt(fan_in), 1/sqrt(fan_in)).
    def linear(key, fan_in, fan_out):
        kw, kb = jax.random.split(key)
        bound = 1.0 / jnp.sqrt(fan_in)
        # Stored transposed: (in, out) so the kernel computes x @ W + b.
        w = jax.random.uniform(kw, (fan_in, fan_out), jnp.float32, -bound, bound)
        b = jax.random.uniform(kb, (1, fan_out), jnp.float32, -bound, bound)
        return w, b

    k1, k2, k3 = jax.random.split(key, 3)
    w1, b1 = linear(k1, state_size, 120)
    w2, b2 = linear(k2, 120, 84)
    w3, b3 = linear(k3, 84, action_size)
    return w1, b1, w2, b2, w3, b3


def reference_forward(x, w1, b1, w2, b2, w3, b3):
    h1 = jnp.maximum(x @ w1 + b1, 0.0)
    h2 = jnp.maximum(h1 @ w2 + b2, 0.0)
    return h2 @ w3 + b3


if __name__ == "__main__":
    state_size = 8
    action_size = 4
    batch = 2

    key = jax.random.PRNGKey(0)
    kx, kp = jax.random.split(key)
    x = jax.random.normal(kx, (batch, state_size), jnp.float32)
    raw_params = init_params(kp, state_size, action_size)

    # One-time parameter prep (padding hoisted out of the per-call path).
    params = prepare_params(*raw_params)

    fwd = jax.jit(functools.partial(mlp_forward, action_size=action_size))
    logits, actions = fwd(x, params)
    jax.block_until_ready((logits, actions))

    # Correctness vs f32 reference; error is bounded by the bf16 output store
    # (dots themselves are f32).
    ref = reference_forward(x, *raw_params)
    assert logits.shape == (batch, action_size)
    assert actions.shape == (batch,)
    assert jnp.allclose(logits, ref, atol=2e-2, rtol=2e-2)

    # Fused argmax must agree exactly with argmax of the kernel's own logits.
    assert jnp.array_equal(actions, jnp.argmax(logits, axis=1).astype(jnp.int32))

    # select_action equivalent for a single state: (1, 1) integer tensor.
    single_action = actions[:1].reshape(1, 1).astype(jnp.int32)
    assert single_action.shape == (1, 1)
    # TODO(synk): PyTorch eval()/train() toggles have no effect here (no dropout/BN).

    print("KERNEL_OK")
</pallas_src>

<mosaic_0001>
module attributes {stable_mosaic.version = 11 : i64} {
  func.func @_mlp_kernel(%arg0: i32, %arg1: memref<8x8xf32, #tpu.memory_space<vmem>>, %arg2: memref<8x128xf32, #tpu.memory_space<vmem>>, %arg3: memref<1x128xf32, #tpu.memory_space<vmem>>, %arg4: memref<128x128xf32, #tpu.memory_space<vmem>>, %arg5: memref<1x128xf32, #tpu.memory_space<vmem>>, %arg6: memref<128x128xf32, #tpu.memory_space<vmem>>, %arg7: memref<1x128xf32, #tpu.memory_space<vmem>>, %arg8: memref<8x128xbf16, #tpu.memory_space<vmem>>) attributes {dimension_semantics = [#tpu.dimension_semantics<parallel>], iteration_bounds = array<i64: 1>, scalar_prefetch = 0 : i64, scratch_operands = 0 : i64, tpu.core_type = #tpu.core_type<tc>, window_params = [{transform_indices = @transform_0, window_bounds = array<i64: 8, 8>}, {pipeline_mode = #tpu.pipeline_mode<synchronous>, transform_indices = @transform_1, window_bounds = array<i64: 8, 128>}, {pipeline_mode = #tpu.pipeline_mode<synchronous>, transform_indices = @transform_2, window_bounds = array<i64: 1, 128>}, {pipeline_mode = #tpu.pipeline_mode<synchronous>, transform_indices = @transform_3, window_bounds = array<i64: 128, 128>}, {pipeline_mode = #tpu.pipeline_mode<synchronous>, transform_indices = @transform_4, window_bounds = array<i64: 1, 128>}, {pipeline_mode = #tpu.pipeline_mode<synchronous>, transform_indices = @transform_5, window_bounds = array<i64: 128, 128>}, {pipeline_mode = #tpu.pipeline_mode<synchronous>, transform_indices = @transform_6, window_bounds = array<i64: 1, 128>}, {transform_indices = @transform_7, window_bounds = array<i64: 8, 128>}]} {
    %c0 = arith.constant 0 : index
    %c0_0 = arith.constant 0 : index
    %0 = vector.load %arg1[%c0, %c0_0] : memref<8x8xf32, #tpu.memory_space<vmem>>, vector<8x8xf32>
    %c0_1 = arith.constant 0 : index
    %c0_2 = arith.constant 0 : index
    %1 = vector.load %arg2[%c0_1, %c0_2] : memref<8x128xf32, #tpu.memory_space<vmem>>, vector<8x128xf32>
    %cst = arith.constant dense<0.000000e+00> : vector<8x128xf32>
    %2 = tpu.matmul %0, %1, %cst {dimension_numbers = #tpu.dot_dimension_numbers<[1], [0], [0], [1], [0, 0, 1, 1], [], []>} : vector<8x8xf32>, vector<8x128xf32>, vector<8x128xf32> -> vector<8x128xf32>
    %c0_3 = arith.constant 0 : index
    %c0_4 = arith.constant 0 : index
    %3 = vector.load %arg3[%c0_3, %c0_4] : memref<1x128xf32, #tpu.memory_space<vmem>>, vector<1x128xf32>
    %4 = vector.broadcast %3 : vector<1x128xf32> to vector<8x128xf32>
    %5 = arith.addf %2, %4 : vector<8x128xf32>
    %cst_5 = arith.constant 0.000000e+00 : f32
    %6 = vector.broadcast %cst_5 : f32 to vector<8x128xf32>
    %7 = arith.maximumf %5, %6 : vector<8x128xf32>
    %c0_6 = arith.constant 0 : index
    %c0_7 = arith.constant 0 : index
    %8 = vector.load %arg4[%c0_6, %c0_7] : memref<128x128xf32, #tpu.memory_space<vmem>>, vector<128x128xf32>
    %cst_8 = arith.constant dense<0.000000e+00> : vector<8x128xf32>
    %9 = tpu.matmul %7, %8, %cst_8 {dimension_numbers = #tpu.dot_dimension_numbers<[1], [0], [0], [1], [0, 0, 1, 1], [], []>} : vector<8x128xf32>, vector<128x128xf32>, vector<8x128xf32> -> vector<8x128xf32>
    %c0_9 = arith.constant 0 : index
    %c0_10 = arith.constant 0 : index
    %10 = vector.load %arg5[%c0_9, %c0_10] : memref<1x128xf32, #tpu.memory_space<vmem>>, vector<1x128xf32>
    %11 = vector.broadcast %10 : vector<1x128xf32> to vector<8x128xf32>
    %12 = arith.addf %9, %11 : vector<8x128xf32>
    %cst_11 = arith.constant 0.000000e+00 : f32
    %13 = vector.broadcast %cst_11 : f32 to vector<8x128xf32>
    %14 = arith.maximumf %12, %13 : vector<8x128xf32>
    %c0_12 = arith.constant 0 : index
    %c0_13 = arith.constant 0 : index
    %15 = vector.load %arg6[%c0_12, %c0_13] : memref<128x128xf32, #tpu.memory_space<vmem>>, vector<128x128xf32>
    %cst_14 = arith.constant dense<0.000000e+00> : vector<8x128xf32>
    %16 = tpu.matmul %14, %15, %cst_14 {dimension_numbers = #tpu.dot_dimension_numbers<[1], [0], [0], [1], [0, 0, 1, 1], [], []>} : vector<8x128xf32>, vector<128x128xf32>, vector<8x128xf32> -> vector<8x128xf32>
    %c0_15 = arith.constant 0 : index
    %c0_16 = arith.constant 0 : index
    %17 = vector.load %arg7[%c0_15, %c0_16] : memref<1x128xf32, #tpu.memory_space<vmem>>, vector<1x128xf32>
    %18 = vector.broadcast %17 : vector<1x128xf32> to vector<8x128xf32>
    %19 = arith.addf %16, %18 : vector<8x128xf32>
    %20 = arith.truncf %19 : vector<8x128xf32> to vector<8x128xbf16>
    %21 = arith.extf %20 : vector<8x128xbf16> to vector<8x128xf32>
    %22 = tpu.iota {dimensions = array<i32: 1>} : vector<8x128xi32>
    %c4_i32 = arith.constant 4 : i32
    %23 = vector.broadcast %c4_i32 : i32 to vector<8x128xi32>
    %24 = arith.cmpi slt, %22, %23 : vector<8x128xi32>
    %cst_17 = arith.constant 0xFF800000 : f32
    %25 = vector.broadcast %cst_17 : f32 to vector<8x128xf32>
    %26 = arith.select %24, %21, %25 : vector<8x128xi1>, vector<8x128xf32>
    %cst_18 = arith.constant dense<0xFF800000> : vector<8xf32>
    %27 = vector.multi_reduction <maximumf>, %26, %cst_18 [1] : vector<8x128xf32> to vector<8xf32>
    %28 = vector.shape_cast %27 : vector<8xf32> to vector<8x1xf32>
    %29 = vector.broadcast %28 : vector<8x1xf32> to vector<8x128xf32>
    %30 = arith.cmpf oeq, %26, %29 : vector<8x128xf32>
    %c128_i32 = arith.constant 128 : i32
    %31 = vector.broadcast %c128_i32 : i32 to vector<8x128xi32>
    %32 = arith.select %30, %22, %31 : vector<8x128xi1>, vector<8x128xi32>
    %cst_19 = arith.constant dense<2147483647> : vector<8xi32>
    %33 = vector.multi_reduction <minsi>, %32, %cst_19 [1] : vector<8x128xi32> to vector<8xi32>
    %34 = vector.shape_cast %33 : vector<8xi32> to vector<8x1xi32>
    %35 = arith.sitofp %34 : vector<8x1xi32> to vector<8x1xf32>
    %c4_i32_20 = arith.constant 4 : i32
    %36 = vector.broadcast %c4_i32_20 : i32 to vector<8x128xi32>
    %37 = arith.cmpi eq, %22, %36 : vector<8x128xi32>
    %38 = vector.shape_cast %35 : vector<8x1xf32> to vector<8x1xf32>
    %39 = vector.broadcast %38 : vector<8x1xf32> to vector<8x128xf32>
    %40 = arith.select %37, %39, %21 : vector<8x128xi1>, vector<8x128xf32>
    %41 = arith.truncf %40 : vector<8x128xf32> to vector<8x128xbf16>
    %c0_21 = arith.constant 0 : index
    %c0_22 = arith.constant 0 : index
    %42 = vector.load %arg8[%c0_21, %c0_22] : memref<8x128xbf16, #tpu.memory_space<vmem>>, vector<8x128xbf16>
    tpu.vector_store %arg8[%c0_21, %c0_22], %41 {strides = array<i32>} : memref<8x128xbf16, #tpu.memory_space<vmem>>, vector<8x128xbf16>,
    return
  }
  func.func @transform_0(%arg0: i32) -> (i32, i32) {
    %c0_i32 = arith.constant 0 : i32
    %c0_i32_0 = arith.constant 0 : i32
    return %arg0, %c0_i32 : i32, i32
  }
  func.func @transform_1(%arg0: i32) -> (i32, i32) {
    %c0_i32 = arith.constant 0 : i32
    %c0_i32_0 = arith.constant 0 : i32
    %c0_i32_1 = arith.constant 0 : i32
    return %c0_i32, %c0_i32_0 : i32, i32
  }
  func.func @transform_2(%arg0: i32) -> (i32, i32) {
    %c0_i32 = arith.constant 0 : i32
    %c0_i32_0 = arith.constant 0 : i32
    %c0_i32_1 = arith.constant 0 : i32
    return %c0_i32, %c0_i32_0 : i32, i32
  }
  func.func @transform_3(%arg0: i32) -> (i32, i32) {
    %c0_i32 = arith.constant 0 : i32
    %c0_i32_0 = arith.constant 0 : i32
    %c0_i32_1 = arith.constant 0 : i32
    return %c0_i32, %c0_i32_0 : i32, i32
  }
  func.func @transform_4(%arg0: i32) -> (i32, i32) {
    %c0_i32 = arith.constant 0 : i32
    %c0_i32_0 = arith.constant 0 : i32
    %c0_i32_1 = arith.constant 0 : i32
    return %c0_i32, %c0_i32_0 : i32, i32
  }
  func.func @transform_5(%arg0: i32) -> (i32, i32) {
    %c0_i32 = arith.constant 0 : i32
    %c0_i32_0 = arith.constant 0 : i32
    %c0_i32_1 = arith.constant 0 : i32
    return %c0_i32, %c0_i32_0 : i32, i32
  }
  func.func @transform_6(%arg0: i32) -> (i32, i32) {
    %c0_i32 = arith.constant 0 : i32
    %c0_i32_0 = arith.constant 0 : i32
    %c0_i32_1 = arith.constant 0 : i32
    return %c0_i32, %c0_i32_0 : i32, i32
  }
  func.func @transform_7(%arg0: i32) -> (i32, i32) {
    %c0_i32 = arith.constant 0 : i32
    %c0_i32_0 = arith.constant 0 : i32
    return %arg0, %c0_i32 : i32, i32
  }
}

</mosaic_0001>

<bundles_post_ra>
// kernel: mlp_forward.1
= control target key start
LH: loop header
LB: loop body
LE: loop exit
PB: predicated region body
PF: predicated region fallthrough
CT: control target
= control target key end

     0   :  { %12 = vsyncpa [#allocation3], 0  ;;  %s634_s0 = inlined_call_operand.vmem [shape: f32[8,8], index: 0, kind: input, shape index: {}]   ;;  %s635_s1 = inlined_call_operand.vmem [shape: f32[8,128], index: 1, kind: input, shape index: {}]   ;;  %s636_s2 = inlined_call_operand.vmem [shape: f32[1,128], index: 2, kind: input, shape index: {}]   ;;  %s637_s3 = inlined_call_operand.hbm [shape: f32[128,128], index: 3, kind: input, shape index: {}]   ;;  %s638_s4 = inlined_call_operand.vmem [shape: f32[1,128], index: 4, kind: input, shape index: {}]   ;;  %s639_s5 = inlined_call_operand.hbm [shape: f32[128,128], index: 5, kind: input, shape index: {}]   ;;  %s640_s6 = inlined_call_operand.vmem [shape: f32[1,128], index: 6, kind: input, shape index: {}]   ;;  %s641_s7 = inlined_call_operand.vmem [shape: bf16[8,128], index: 7, kind: output, shape index: {}]  }
   0x1   :  { %13 = vsyncpa [#allocation5], 0  ;;  %s525_s24 = smov [#allocation2]  }
   0x2   :  { %s25_s25 = sshll.u32 %s525_s24, 4  ;;  %s26_s25 = int_to_ptr.vmem [resolvable:$true] %s25_s25 }
   0x3   :  { %s489_s26 = scalar_lea.vmem %s26_s25, 2048  ;;  %p494_p1 = scmp.lt.s32.totalorder %s26_s25, %s26_s25 }
   0x4   :  { %p490_p0 = scmp.ne.s32.totalorder %s26_s25, %s489_s26  ;;  %p495_p2 = scmp.lt.s32.totalorder %s489_s26, %s489_s26 }
   0x6   :  { %p496_p3 = por %p495_p2, %p494_p1 }
   0x8   :  { %p497_p4 = pnand %p496_p3, %p490_p0 }
   0xa   :  { %500 = shalt.err (!%p497_p4)
}
   0xb   :  { %s526_s27 = smov 128   ;;  %s527_s28 = smov 8  }
   0xc   :  { %31 = dma.hbm_to_vmem [thread:$0]  %s637_s3, 2048, %s26_s25, [#allocation3], %s526_s27, %s526_s27, %s527_s28  }
   0xd   :  { %s528_s8 = smov [#allocation4]  }
   0xe   :  { %s39_s9 = sshll.u32 %s528_s8, 4  ;;  %s40_s9 = int_to_ptr.vmem [resolvable:$true] %s39_s9 }
   0xf   :  { %s509_s10 = scalar_lea.vmem %s40_s9, 2048  ;;  %p514_p6 = scmp.lt.s32.totalorder %s40_s9, %s40_s9 }
  0x10   :  { %p510_p5 = scmp.ne.s32.totalorder %s40_s9, %s509_s10  ;;  %p515_p7 = scmp.lt.s32.totalorder %s509_s10, %s509_s10 }
  0x12   :  { %p516_p8 = por %p515_p7, %p514_p6 }
  0x14   :  { %p517_p9 = pnand %p516_p8, %p510_p5 }
  0x16   :  { %520 = shalt.err (!%p517_p9)
}
  0x17   :  { %45 = dma.hbm_to_vmem [thread:$0]  %s639_s5, 2048, %s40_s9, [#allocation5], %s526_s27, %s526_s27, %s527_s28  }
  0x18   :  { %521 = dma.done.wait [#allocation3], 2048  }
  0x19   :  { %522 = vsyncadd [#allocation3], 4294965248 }
  0x1a   :  { %523 = dma.done.wait [#allocation5], 2048  }
  0x1b   :  { %524 = vsyncadd [#allocation5], 4294965248  ;;  %v529_v0 = vmov 0.0   ;;  %vm530_vm0 = vmmov 0   ;;  %vm63_vm1 = vcmask 64512   ;;  %v55_v1 = vld [vmem:[%s635_s1] sm:$0xff]  ;;  %v327_v45 = vlaneseq }
  0x1c   :  { %400 = vmatprep.subr.mxu0 %v529_v0  ;;  %402 = vmatprep.mubr.msk.f32.mxu0 %vm530_vm0, %v529_v0  ;;  %v54_v2 = vld [vmem:[%s634_s0] sm:$0xff]  ;;  %v153_v3 = vld [vmem:[#allocation2 + $0x78] sm:$0xff]  ;;  %v152_v4 = vld [vmem:[#allocation2 + $0x70] sm:$0xff] }
  0x1d   :  { %405 = vmatprep.subr.mxu1 %v529_v0  ;;  %437 = vmatprep.mubr.msk.f32.mxu1 %vm530_vm0, %v529_v0  ;;  %v151_v5 = vld [vmem:[#allocation2 + $0x68] sm:$0xff]  ;;  %v150_v6 = vld [vmem:[#allocation2 + $0x60] sm:$0xff]  ;;  %v149_v7 = vld [vmem:[#allocation2 + $0x58] sm:$0xff]  ;;  %v328_v48 = vand.u32 127, %v327_v45 }
  0x1e   :  { %401 = vmatpush3.msra.mxu0 %v55_v1  ;;  %406 = vmatpush3.msra.mxu1 %v153_v3  ;;  %v148_v8 = vld [vmem:[#allocation2 + $0x50] sm:$0xff]  ;;  %v147_v9 = vld [vmem:[#allocation2 + $0x48] sm:$0xff]  ;;  %v146_v10 = vld [vmem:[#allocation2 + $0x40] sm:$0xff] }
  0x1f   :  { %403 = vmatmul.mubr.msk.f32.vlgmr.msra.gmra.mxu0 %vm63_vm1, %v54_v2  ;;  %407 = vmatprep.subr.mxu1 %v529_v0  ;;  %v145_v11 = vld [vmem:[#allocation2 + $0x38] sm:$0xff]  ;;  %v144_v12 = vld [vmem:[#allocation2 + $0x30] sm:$0xff]  ;;  %v143_v13 = vld [vmem:[#allocation2 + $0x28] sm:$0xff]  ;;  %vm329_vm2 = vcmp.lt.s32.totalorder %v328_v48, 4  ;;  %vm350_vm5 = vcmp.eq.s32.totalorder %v328_v48, 4 }
  0x20   :  { %408 = vmatpush3.msra.mxu1 %v152_v4  ;;  %440 = vmatprep.subr.mxu0 %v529_v0  ;;  %v142_v14 = vld [vmem:[#allocation2 + $0x20] sm:$0xff]  ;;  %v141_v15 = vld [vmem:[#allocation2 + $0x18] sm:$0xff]  ;;  %v140_v16 = vld [vmem:[#allocation2 + $0x10] sm:$0xff] }
  0x21   :  { %409 = vmatprep.subr.mxu1 %v529_v0  ;;  %472 = vmatprep.mubr.msk.f32.mxu0 %vm530_vm0, %v529_v0  ;;  %v139_v17 = vld [vmem:[#allocation2 + $0x8] sm:$0xff]  ;;  %v138_v18 = vld [vmem:[#allocation2] sm:$0xff]  ;;  %v247_v19 = vld [vmem:[#allocation4 + $0x78] sm:$0xff] }
  0x22   :  { %410 = vmatpush3.msra.mxu1 %v151_v5  ;;  %v246_v20 = vld [vmem:[#allocation4 + $0x70] sm:$0xff]  ;;  %441 = vmatpush3.msra.mxu0 %v247_v19  ;;  %v245_v21 = vld [vmem:[#allocation4 + $0x68] sm:$0xff]  ;;  %v244_v22 = vld [vmem:[#allocation4 + $0x60] sm:$0xff] }
  0x23   :  { %411 = vmatprep.subr.mxu1 %v529_v0  ;;  %442 = vmatprep.subr.mxu0 %v529_v0  ;;  %v243_v23 = vld [vmem:[#allocation4 + $0x58] sm:$0xff]  ;;  %v242_v24 = vld [vmem:[#allocation4 + $0x50] sm:$0xff]  ;;  %v241_v25 = vld [vmem:[#allocation4 + $0x48] sm:$0xff] }
  0x24   :  { %412 = vmatpush3.msra.mxu1 %v150_v6  ;;  %443 = vmatpush3.msra.mxu0 %v246_v20  ;;  %v240_v26 = vld [vmem:[#allocation4 + $0x40] sm:$0xff]  ;;  %v239_v27 = vld [vmem:[#allocation4 + $0x38] sm:$0xff]  ;;  %v238_v28 = vld [vmem:[#allocation4 + $0x30] sm:$0xff] }
  0x25   :  { %413 = vmatprep.subr.mxu1 %v529_v0  ;;  %444 = vmatprep.subr.mxu0 %v529_v0  ;;  %v237_v29 = vld [vmem:[#allocation4 + $0x28] sm:$0xff]  ;;  %v236_v30 = vld [vmem:[#allocation4 + $0x20] sm:$0xff]  ;;  %v235_v31 = vld [vmem:[#allocation4 + $0x18] sm:$0xff] }
  0x26   :  { %414 = vmatpush3.msra.mxu1 %v149_v7  ;;  %445 = vmatpush3.msra.mxu0 %v245_v21  ;;  %v360_v32 = vld [vmem:[%s636_s2] ss:$0 sm:$0xff]  ;;  %v234_v37 = vld [vmem:[#allocation4 + $0x10] sm:$0xff]  ;;  %v233_v38 = vld [vmem:[#allocation4 + $0x8] sm:$0xff] }
  0x27   :  { %415 = vmatprep.subr.mxu1 %v529_v0  ;;  %446 = vmatprep.subr.mxu0 %v529_v0  ;;  %v232_v39 = vld [vmem:[#allocation4] sm:$0xff] }
  0x28   :  { %416 = vmatpush3.msra.mxu1 %v148_v8  ;;  %447 = vmatpush3.msra.mxu0 %v244_v22  ;;  %v362_v40 = vld [vmem:[%s638_s4] ss:$0 sm:$0xff] }
  0x29   :  { %417 = vmatprep.subr.mxu1 %v529_v0  ;;  %448 = vmatprep.subr.mxu0 %v529_v0  ;;  %v363_v46 = vld [vmem:[%s640_s6] ss:$0 sm:$0xff] }
  0x2a   :  { %418 = vmatpush3.msra.mxu1 %v147_v9  ;;  %449 = vmatpush3.msra.mxu0 %v243_v23 }
  0x2b   :  { %419 = vmatprep.subr.mxu1 %v529_v0  ;;  %450 = vmatprep.subr.mxu0 %v529_v0 }
  0x2c   :  { %420 = vmatpush3.msra.mxu1 %v146_v10  ;;  %451 = vmatpush3.msra.mxu0 %v242_v24 }
  0x2d   :  { %421 = vmatprep.subr.mxu1 %v529_v0  ;;  %452 = vmatprep.subr.mxu0 %v529_v0 }
  0x2e   :  { %422 = vmatpush3.msra.mxu1 %v145_v11  ;;  %453 = vmatpush3.msra.mxu0 %v241_v25 }
  0x2f   :  { %423 = vmatprep.subr.mxu1 %v529_v0  ;;  %454 = vmatprep.subr.mxu0 %v529_v0 }
  0x30   :  { %424 = vmatpush3.msra.mxu1 %v144_v12  ;;  %455 = vmatpush3.msra.mxu0 %v240_v26 }
  0x31   :  { %425 = vmatprep.subr.mxu1 %v529_v0  ;;  %456 = vmatprep.subr.mxu0 %v529_v0 }
  0x32   :  { %426 = vmatpush3.msra.mxu1 %v143_v13  ;;  %457 = vmatpush3.msra.mxu0 %v239_v27 }
  0x33   :  { %427 = vmatprep.subr.mxu1 %v529_v0  ;;  %458 = vmatprep.subr.mxu0 %v529_v0 }
  0x34   :  { %428 = vmatpush3.msra.mxu1 %v142_v14  ;;  %459 = vmatpush3.msra.mxu0 %v238_v28 }
  0x35   :  { %429 = vmatprep.subr.mxu1 %v529_v0  ;;  %460 = vmatprep.subr.mxu0 %v529_v0 }
  0x36   :  { %430 = vmatpush3.msra.mxu1 %v141_v15  ;;  %461 = vmatpush3.msra.mxu0 %v237_v29 }
  0x37   :  { %431 = vmatprep.subr.mxu1 %v529_v0  ;;  %462 = vmatprep.subr.mxu0 %v529_v0 }
  0x38   :  { %432 = vmatpush3.msra.mxu1 %v140_v16  ;;  %463 = vmatpush3.msra.mxu0 %v236_v30 }
  0x39   :  { %433 = vmatprep.subr.mxu1 %v529_v0  ;;  %464 = vmatprep.subr.mxu0 %v529_v0 }
  0x3a   :  { %434 = vmatpush3.msra.mxu1 %v139_v17  ;;  %465 = vmatpush3.msra.mxu0 %v235_v31 }
  0x3b   :  { %435 = vmatprep.subr.mxu1 %v529_v0  ;;  %466 = vmatprep.subr.mxu0 %v529_v0 }
  0x3c   :  { %436 = vmatpush3.msra.mxu1 %v138_v18  ;;  %467 = vmatpush3.msra.mxu0 %v234_v37 }
  0x3d   :  { %468 = vmatprep.subr.mxu0 %v529_v0 }
  0x3e   :  { %469 = vmatpush3.msra.mxu0 %v233_v38 }
  0x3f   :  { %470 = vmatprep.subr.mxu0 %v529_v0 }
  0x40   :  { %471 = vmatpush3.msra.mxu0 %v232_v39 }
  0xdf   :  { %v133_v33 = vpop.f32.mrf.mxu0 }
  0xe0   :  { %v134_v34 = vadd.f32 %v360_v32, %v133_v33 }
  0xe1   :  { %v404_v35 = vpop.f32.mrf.mxu0 }
  0xe2   :  { %v137_v36 = vmax.f32 %v134_v34, 0.0 }
  0xe4   :  { %438 = vmatmul.mubr.f32.vlgmr.msra.gmra.mxu1 %v137_v36 }
 0x1a4   :  { %v227_v41 = vpop.f32.mrf.mxu1 }
 0x1a5   :  { %v228_v42 = vadd.f32 %v362_v40, %v227_v41 }
 0x1a6   :  { %v439_v43 = vpop.f32.mrf.mxu1 }
 0x1a7   :  { %v231_v44 = vmax.f32 %v228_v42, 0.0 }
 0x1a9   :  { %473 = vmatmul.mubr.f32.vlgmr.msra.gmra.mxu0 %v231_v44 }
 0x269   :  { %v321_v47 = vpop.f32.mrf.mxu0 }
 0x26a   :  { %v322_v49 = vadd.f32 %v363_v46, %v321_v47 }
 0x26b   :  { %v474_v50 = vpop.f32.mrf.mxu0 }
 0x26c   :  { %v325_v51 = vpack.c.bf16 %v322_v49, %v322_v49 }
 0x26e   :  { %v326_v52 = vunpack.c.l.bf16 %v325_v51 }
 0x270   :  { %v330_v53 = vsel %vm329_vm2, %v326_v52, -inf }
 0x271   :  { %331 = vmax.xlane.f32.xlu0 %v330_v53 }
 0x2fa   :  { %v332_v54 = vpop.xlane.xlu0 %331 }
 0x2fb   :  { %vm333_vm3 = vcmp.eq.f32.partialorder %v330_v53, %v332_v54 }
 0x2fc   :  { %v334_v55 = vsel %vm333_vm3, %v328_v48, 128 }
 0x2fd   :  { %v336_v56 = vshra.s32 %v334_v55, 16  ;;  %v335_v58 = vand.u32 65535, %v334_v55 }
 0x2ff   :  { %v338_v57 = vcvt.s32.f32 %v336_v56  ;;  %v337_v60 = vcvt.s32.f32 %v335_v58 }
 0x301   :  { %339 = vmin.xlane.f32.xlu0 %v338_v57 }
 0x38a   :  { %v340_v59 = vpop.xlane.xlu0 %339 }
 0x38b   :  { %vm341_vm4 = vcmp.eq.f32.partialorder %v338_v57, %v340_v59  ;;  %v346_v62 = vcvt.f32.s32 %v340_v59 }
 0x38c   :  { %v342_v61 = vsel %vm341_vm4, %v337_v60, inf }
 0x38d   :  { %343 = vmin.xlane.f32.xlu1 %v342_v61  ;;  %v347_v0 = vshll.u32 %v346_v62, 16 }
 0x416   :  { %v344_v63 = vpop.xlane.xlu1 %343 }
 0x417   :  { %v345_v1 = vcvt.f32.s32 %v344_v63 }
 0x419   :  { %v348_v2 = vadd.s32 %v347_v0, %v345_v1 }
 0x41b   :  { %v349_v3 = vcvt.s32.f32 %v348_v2 }
 0x41d   :  { %v351_v4 = vsel %vm350_vm5, %v349_v3, %v326_v52 }
 0x41e   :  { %v352_v5 = vpack.c.bf16 %v351_v4, %v351_v4 }
 0x420   :  { %353 = vst [vmem:[%s641_s7] sm:$0xf] %v352_v5 }
 0x421   :  { %358 = vsyncpa [#allocation3], 1 }
 0x422   :  { %359 = vsyncpa [#allocation5], 1 }

</bundles_post_ra>
